<compile_context>
chip_gen: v6e
topology: v6e:2x2x1
jax: 0.10.0
libtpu: 0.0.40
codegen_flags: <defaults>
</compile_context>

<pallas_src>
import jax
import jax.numpy as jnp
from jax import lax
from jax.experimental import pallas as pl
from jax.experimental.pallas import tpu as pltpu

INPUT_SIZE = 1
HIDDEN_SIZE = 8
NUM_DIRECTIONS = 2
OUTPUT_SIZE = 1


def _make_lstm_kernel(T, B, H):
    """Build a kernel closed over static shapes and slab row offsets."""
    G = 4 * H
    # --- static row offsets inside the packed parameter slab (width G) ---
    o_wih_f, o_b_f, o_whh_f = 0, 1, 2
    o_wih_b, o_b_b, o_whh_b = 2 + H, 3 + H, 4 + H
    o_h0f = 4 + 2 * H
    o_c0f = o_h0f + B
    o_h0b = o_c0f + B
    o_c0b = o_h0b + B
    o_lin = o_c0b + B

    def kernel(x_ref, p_ref, pred_ref):
        # ---- one-time unpack of the parameter slab (off the serial chain) ----
        w_ih_f = p_ref[o_wih_f:o_wih_f + 1, :]        # (1, G)
        b_f = p_ref[o_b_f:o_b_f + 1, :]               # (1, G)
        w_hh_f = p_ref[o_whh_f:o_whh_f + H, :]        # (H, G)
        w_ih_b = p_ref[o_wih_b:o_wih_b + 1, :]
        b_b = p_ref[o_b_b:o_b_b + 1, :]
        w_hh_b = p_ref[o_whh_b:o_whh_b + H, :]
        h_f = p_ref[o_h0f:o_h0f + B, 0:H]             # (B, H)
        c_f = p_ref[o_c0f:o_c0f + B, 0:H]
        h0_b = p_ref[o_h0b:o_h0b + B, 0:H]
        c0_b = p_ref[o_c0b:o_c0b + B, 0:H]
        lin = p_ref[o_lin:o_lin + 1, :]               # (1, G): [w_lin | b_lin | 0]

        x = x_ref[...]                                # (T, B, 1) time-major

        # ---- hoisted: input + bias gate contribution for all T steps ----
        # input_size == 1 -> x_t @ W_ih^T is a pure broadcast multiply (VPU).
        xg_f = x * w_ih_f[None] + b_f[None]           # (T, B, G)
        xg_b_last = x[T - 1] * w_ih_b + b_b           # (B, G), only step needed

        # ---- hoisted: lane mask selecting the g-gate lanes [2H, 3H) ----
        lane = lax.broadcasted_iota(jnp.int32, (B, G), 1)
        g_mask = (lane >= 2 * H) & (lane < 3 * H)

        def cell(xg_t, h, c, w_hh):
            # gates in PyTorch order i, f, g, o along the G lanes.
            gates = xg_t + jnp.dot(h, w_hh, preferred_element_type=jnp.float32)
            sig = jax.nn.sigmoid(gates)               # one whole-vreg EUP pass
            th = jnp.tanh(gates)                      # one whole-vreg EUP pass
            act = jnp.where(g_mask, th, sig)          # g lanes tanh, rest sigmoid
            i = act[:, 0:H]
            f = act[:, H:2 * H]
            g = act[:, 2 * H:3 * H]
            o = act[:, 3 * H:4 * H]
            c_new = f * c + i * g
            h_new = o * jnp.tanh(c_new)
            return h_new, c_new

        # ---- forward recurrence: fully unrolled straight-line code ----
        for t in range(T):
            h_f, c_f = cell(xg_f[t], h_f, c_f, w_hh_f)

        # ---- backward direction: single cell evaluation on x[T-1] ----
        # (independent of the forward chain; scheduler can interleave it)
        h_b, _ = cell(xg_b_last, h0_b, c0_b, w_hh_b)

        # ---- linear head without a concat (output_size == 1) ----
        w_lin_f = lin[:, 0:H]                         # (1, H)
        w_lin_b = lin[:, H:2 * H]                     # (1, H)
        b_lin = lin[:, 2 * H:2 * H + 1]               # (1, 1)
        # single XLU cross-lane reduction: sum(a)+sum(b) == sum(a+b)
        pred = (jnp.sum(h_f * w_lin_f + h_b * w_lin_b, axis=-1, keepdims=True)
                + b_lin)
        pred_ref[...] = pred.astype(pred_ref.dtype)

    return kernel


def _pack_params(w_ih, w_hh, b_ih, b_hh, h0, c0, w_lin, b_lin, B, H):
    """Pack all parameters + initial states into one (rows, 4H) f32 slab."""
    G = 4 * H

    def pad_cols(a):
        return jnp.pad(a, ((0, 0), (0, G - a.shape[-1])))

    rows = []
    for d in range(NUM_DIRECTIONS):
        rows.append(jnp.transpose(w_ih[d]).reshape(1, G))      # (1, G), I == 1
        rows.append((b_ih[d] + b_hh[d]).reshape(1, G))          # (1, G)
        rows.append(jnp.transpose(w_hh[d]))                     # (H, G)
    rows.append(pad_cols(h0[0]))                                # (B, G)
    rows.append(pad_cols(c0[0]))
    rows.append(pad_cols(h0[1]))
    rows.append(pad_cols(c0[1]))
    lin_row = jnp.concatenate([w_lin.reshape(1, 2 * H),
                               b_lin.reshape(1, 1)], axis=1)    # (1, 2H+1)
    rows.append(pad_cols(lin_row))
    return jnp.concatenate(rows, axis=0).astype(jnp.float32)


def lstm_forward(x, w_ih, w_hh, b_ih, b_hh, h0, c0, w_lin, b_lin):
    """x: (B, T, 1) batch-first, like the PyTorch module. Returns (B, 1)."""
    B, T, I = x.shape
    assert I == INPUT_SIZE
    H = w_hh.shape[-1]

    x_tm = jnp.transpose(x, (1, 0, 2))                          # (T, B, 1)
    params = _pack_params(w_ih, w_hh, b_ih, b_hh, h0, c0, w_lin, b_lin, B, H)

    vmem = pl.BlockSpec(memory_space=pltpu.MemorySpace.VMEM)
    return pl.pallas_call(
        _make_lstm_kernel(T, B, H),
        out_shape=jax.ShapeDtypeStruct((B, OUTPUT_SIZE), jnp.float32),
        in_specs=[vmem, vmem],
        out_specs=vmem,
    )(x_tm, params)


def lstm_ref(x, w_ih, w_hh, b_ih, b_hh, h0, c0, w_lin, b_lin):
    """Plain-JAX reference matching PyTorch nn.LSTM(bidirectional) semantics."""
    B, T, _ = x.shape
    H = HIDDEN_SIZE

    def run(d, xs):
        h, c = h0[d], c0[d]
        hs = []
        for t in range(T):
            gates = xs[:, t, :] @ w_ih[d].T + h @ w_hh[d].T + b_ih[d] + b_hh[d]
            i = jax.nn.sigmoid(gates[:, :H])
            f = jax.nn.sigmoid(gates[:, H:2 * H])
            g = jnp.tanh(gates[:, 2 * H:3 * H])
            o = jax.nn.sigmoid(gates[:, 3 * H:])
            c = f * c + i * g
            h = o * jnp.tanh(c)
            hs.append(h)
        return hs

    hs_f = run(0, x)
    hs_b = run(1, x[:, ::-1, :])
    last = jnp.concatenate([hs_f[-1], hs_b[0]], axis=-1)        # output[:, -1, :]
    return last @ w_lin.T + b_lin


if __name__ == "__main__":
    B, T = 2, 8
    H, I = HIDDEN_SIZE, INPUT_SIZE
    key = jax.random.PRNGKey(0)
    ks = jax.random.split(key, 10)

    # Deterministic parameter init (PyTorch-style uniform(-1/sqrt(H), 1/sqrt(H))).
    k_scale = 1.0 / jnp.sqrt(jnp.float32(H))
    w_ih = jax.random.uniform(ks[0], (NUM_DIRECTIONS, 4 * H, I), jnp.float32,
                              -k_scale, k_scale)
    w_hh = jax.random.uniform(ks[1], (NUM_DIRECTIONS, 4 * H, H), jnp.float32,
                              -k_scale, k_scale)
    b_ih = jax.random.uniform(ks[2], (NUM_DIRECTIONS, 4 * H), jnp.float32,
                              -k_scale, k_scale)
    b_hh = jax.random.uniform(ks[3], (NUM_DIRECTIONS, 4 * H), jnp.float32,
                              -k_scale, k_scale)
    w_lin = jax.random.uniform(ks[4], (OUTPUT_SIZE, NUM_DIRECTIONS * H),
                               jnp.float32, -1.0 / 4.0, 1.0 / 4.0)
    b_lin = jax.random.uniform(ks[5], (OUTPUT_SIZE,), jnp.float32,
                               -1.0 / 4.0, 1.0 / 4.0)

    # Module input and the random initial states drawn in forward().
    # TODO(synk): the PyTorch forward uses torch.randn for h_0/c_0; sampled
    # deterministically from the JAX PRNG here instead.
    x = jax.random.normal(ks[6], (B, T, I), jnp.float32)
    h0 = jax.random.normal(ks[7], (NUM_DIRECTIONS, B, H), jnp.float32)
    c0 = jax.random.normal(ks[8], (NUM_DIRECTIONS, B, H), jnp.float32)

    pred = lstm_forward(x, w_ih, w_hh, b_ih, b_hh, h0, c0, w_lin, b_lin)
    jax.block_until_ready(pred)

    ref = lstm_ref(x, w_ih, w_hh, b_ih, b_hh, h0, c0, w_lin, b_lin)
    assert pred.shape == (B, OUTPUT_SIZE)
    assert jnp.allclose(pred, ref, atol=1e-4, rtol=1e-4), (pred, ref)
    print("KERNEL_OK")
</pallas_src>

<mosaic_0001>
module attributes {stable_mosaic.version = 11 : i64} {
  func.func @kernel(%arg0: memref<8x2x1xf32, #tpu.memory_space<vmem>>, %arg1: memref<29x32xf32, #tpu.memory_space<vmem>>, %arg2: memref<2x1xf32, #tpu.memory_space<vmem>>) attributes {dimension_semantics = [], scalar_prefetch = 0 : i64, scratch_operands = 0 : i64, tpu.core_type = #tpu.core_type<tc>} {
    %c0 = arith.constant 0 : index
    %c0_0 = arith.constant 0 : index
    %0 = vector.load %arg1[%c0, %c0_0] : memref<29x32xf32, #tpu.memory_space<vmem>>, vector<1x32xf32>
    %c1 = arith.constant 1 : index
    %c0_1 = arith.constant 0 : index
    %1 = vector.load %arg1[%c1, %c0_1] : memref<29x32xf32, #tpu.memory_space<vmem>>, vector<1x32xf32>
    %c2 = arith.constant 2 : index
    %c0_2 = arith.constant 0 : index
    %2 = vector.load %arg1[%c2, %c0_2] : memref<29x32xf32, #tpu.memory_space<vmem>>, vector<8x32xf32>
    %c10 = arith.constant 10 : index
    %c0_3 = arith.constant 0 : index
    %3 = vector.load %arg1[%c10, %c0_3] : memref<29x32xf32, #tpu.memory_space<vmem>>, vector<1x32xf32>
    %c11 = arith.constant 11 : index
    %c0_4 = arith.constant 0 : index
    %4 = vector.load %arg1[%c11, %c0_4] : memref<29x32xf32, #tpu.memory_space<vmem>>, vector<1x32xf32>
    %c12 = arith.constant 12 : index
    %c0_5 = arith.constant 0 : index
    %5 = vector.load %arg1[%c12, %c0_5] : memref<29x32xf32, #tpu.memory_space<vmem>>, vector<8x32xf32>
    %c20 = arith.constant 20 : index
    %c0_6 = arith.constant 0 : index
    %6 = vector.load %arg1[%c20, %c0_6] : memref<29x32xf32, #tpu.memory_space<vmem>>, vector<2x8xf32>
    %c22 = arith.constant 22 : index
    %c0_7 = arith.constant 0 : index
    %7 = vector.load %arg1[%c22, %c0_7] : memref<29x32xf32, #tpu.memory_space<vmem>>, vector<2x8xf32>
    %c24 = arith.constant 24 : index
    %c0_8 = arith.constant 0 : index
    %8 = vector.load %arg1[%c24, %c0_8] : memref<29x32xf32, #tpu.memory_space<vmem>>, vector<2x8xf32>
    %c26 = arith.constant 26 : index
    %c0_9 = arith.constant 0 : index
    %9 = vector.load %arg1[%c26, %c0_9] : memref<29x32xf32, #tpu.memory_space<vmem>>, vector<2x8xf32>
    %c28 = arith.constant 28 : index
    %c0_10 = arith.constant 0 : index
    %10 = vector.load %arg1[%c28, %c0_10] : memref<29x32xf32, #tpu.memory_space<vmem>>, vector<1x32xf32>
    %c0_11 = arith.constant 0 : index
    %c0_12 = arith.constant 0 : index
    %c0_13 = arith.constant 0 : index
    %11 = vector.load %arg0[%c0_11, %c0_12, %c0_13] : memref<8x2x1xf32, #tpu.memory_space<vmem>>, vector<8x2x1xf32>
    %12 = vector.shape_cast %0 : vector<1x32xf32> to vector<1x1x32xf32>
    %13 = vector.broadcast %11 : vector<8x2x1xf32> to vector<8x2x32xf32>
    %14 = vector.broadcast %12 : vector<1x1x32xf32> to vector<8x2x32xf32>
    %15 = arith.mulf %13, %14 : vector<8x2x32xf32>
    %16 = vector.shape_cast %1 : vector<1x32xf32> to vector<1x1x32xf32>
    %17 = vector.broadcast %16 : vector<1x1x32xf32> to vector<8x2x32xf32>
    %18 = arith.addf %15, %17 : vector<8x2x32xf32>
    %19 = vector.extract_strided_slice %11 {offsets = [7, 0, 0], sizes = [1, 2, 1], strides = [1, 1, 1]} : vector<8x2x1xf32> to vector<1x2x1xf32>
    %20 = vector.shape_cast %19 : vector<1x2x1xf32> to vector<2x1xf32>
    %21 = vector.broadcast %20 : vector<2x1xf32> to vector<2x32xf32>
    %22 = vector.broadcast %3 : vector<1x32xf32> to vector<2x32xf32>
    %23 = arith.mulf %21, %22 : vector<2x32xf32>
    %24 = vector.broadcast %4 : vector<1x32xf32> to vector<2x32xf32>
    %25 = arith.addf %23, %24 : vector<2x32xf32>
    %26 = tpu.iota {dimensions = array<i32: 1>} : vector<2x32xi32>
    %c16_i32 = arith.constant 16 : i32
    %27 = vector.broadcast %c16_i32 : i32 to vector<2x32xi32>
    %28 = arith.cmpi sge, %26, %27 : vector<2x32xi32>
    %c24_i32 = arith.constant 24 : i32
    %29 = vector.broadcast %c24_i32 : i32 to vector<2x32xi32>
    %30 = arith.cmpi slt, %26, %29 : vector<2x32xi32>
    %31 = arith.andi %28, %30 : vector<2x32xi1>
    %32 = vector.extract_strided_slice %18 {offsets = [0, 0, 0], sizes = [1, 2, 32], strides = [1, 1, 1]} : vector<8x2x32xf32> to vector<1x2x32xf32>
    %33 = vector.shape_cast %32 : vector<1x2x32xf32> to vector<2x32xf32>
    %cst = arith.constant dense<0.000000e+00> : vector<2x32xf32>
    %34 = tpu.matmul %6, %2, %cst {dimension_numbers = #tpu.dot_dimension_numbers<[1], [0], [0], [1], [0, 0, 1, 1], [], []>} : vector<2x8xf32>, vector<8x32xf32>, vector<2x32xf32> -> vector<2x32xf32>
    %35 = arith.addf %33, %34 : vector<2x32xf32>
    %36 = arith.negf %35 : vector<2x32xf32>
    %37 = math.exp %36 : vector<2x32xf32>
    %cst_14 = arith.constant 1.000000e+00 : f32
    %38 = vector.broadcast %cst_14 : f32 to vector<2x32xf32>
    %39 = arith.addf %38, %37 : vector<2x32xf32>
    %40 = arith.divf %38, %39 : vector<2x32xf32>
    %41 = math.tanh %35 : vector<2x32xf32>
    %42 = arith.select %31, %41, %40 : vector<2x32xi1>, vector<2x32xf32>
    %43 = vector.extract_strided_slice %42 {offsets = [0, 0], sizes = [2, 8], strides = [1, 1]} : vector<2x32xf32> to vector<2x8xf32>
    %44 = vector.extract_strided_slice %42 {offsets = [0, 8], sizes = [2, 8], strides = [1, 1]} : vector<2x32xf32> to vector<2x8xf32>
    %45 = vector.extract_strided_slice %42 {offsets = [0, 16], sizes = [2, 8], strides = [1, 1]} : vector<2x32xf32> to vector<2x8xf32>
    %46 = vector.extract_strided_slice %42 {offsets = [0, 24], sizes = [2, 8], strides = [1, 1]} : vector<2x32xf32> to vector<2x8xf32>
    %47 = arith.mulf %44, %7 : vector<2x8xf32>
    %48 = arith.mulf %43, %45 : vector<2x8xf32>
    %49 = arith.addf %47, %48 : vector<2x8xf32>
    %50 = math.tanh %49 : vector<2x8xf32>
    %51 = arith.mulf %46, %50 : vector<2x8xf32>
    %52 = vector.extract_strided_slice %18 {offsets = [1, 0, 0], sizes = [1, 2, 32], strides = [1, 1, 1]} : vector<8x2x32xf32> to vector<1x2x32xf32>
    %53 = vector.shape_cast %52 : vector<1x2x32xf32> to vector<2x32xf32>
    %cst_15 = arith.constant dense<0.000000e+00> : vector<2x32xf32>
    %54 = tpu.matmul %51, %2, %cst_15 {dimension_numbers = #tpu.dot_dimension_numbers<[1], [0], [0], [1], [0, 0, 1, 1], [], []>} : vector<2x8xf32>, vector<8x32xf32>, vector<2x32xf32> -> vector<2x32xf32>
    %55 = arith.addf %53, %54 : vector<2x32xf32>
    %56 = arith.negf %55 : vector<2x32xf32>
    %57 = math.exp %56 : vector<2x32xf32>
    %cst_16 = arith.constant 1.000000e+00 : f32
    %58 = vector.broadcast %cst_16 : f32 to vector<2x32xf32>
    %59 = arith.addf %58, %57 : vector<2x32xf32>
    %60 = arith.divf %58, %59 : vector<2x32xf32>
    %61 = math.tanh %55 : vector<2x32xf32>
    %62 = arith.select %31, %61, %60 : vector<2x32xi1>, vector<2x32xf32>
    %63 = vector.extract_strided_slice %62 {offsets = [0, 0], sizes = [2, 8], strides = [1, 1]} : vector<2x32xf32> to vector<2x8xf32>
    %64 = vector.extract_strided_slice %62 {offsets = [0, 8], sizes = [2, 8], strides = [1, 1]} : vector<2x32xf32> to vector<2x8xf32>
    %65 = vector.extract_strided_slice %62 {offsets = [0, 16], sizes = [2, 8], strides = [1, 1]} : vector<2x32xf32> to vector<2x8xf32>
    %66 = vector.extract_strided_slice %62 {offsets = [0, 24], sizes = [2, 8], strides = [1, 1]} : vector<2x32xf32> to vector<2x8xf32>
    %67 = arith.mulf %64, %49 : vector<2x8xf32>
    %68 = arith.mulf %63, %65 : vector<2x8xf32>
    %69 = arith.addf %67, %68 : vector<2x8xf32>
    %70 = math.tanh %69 : vector<2x8xf32>
    %71 = arith.mulf %66, %70 : vector<2x8xf32>
    %72 = vector.extract_strided_slice %18 {offsets = [2, 0, 0], sizes = [1, 2, 32], strides = [1, 1, 1]} : vector<8x2x32xf32> to vector<1x2x32xf32>
    %73 = vector.shape_cast %72 : vector<1x2x32xf32> to vector<2x32xf32>
    %cst_17 = arith.constant dense<0.000000e+00> : vector<2x32xf32>
    %74 = tpu.matmul %71, %2, %cst_17 {dimension_numbers = #tpu.dot_dimension_numbers<[1], [0], [0], [1], [0, 0, 1, 1], [], []>} : vector<2x8xf32>, vector<8x32xf32>, vector<2x32xf32> -> vector<2x32xf32>
    %75 = arith.addf %73, %74 : vector<2x32xf32>
    %76 = arith.negf %75 : vector<2x32xf32>
    %77 = math.exp %76 : vector<2x32xf32>
    %cst_18 = arith.constant 1.000000e+00 : f32
    %78 = vector.broadcast %cst_18 : f32 to vector<2x32xf32>
    %79 = arith.addf %78, %77 : vector<2x32xf32>
    %80 = arith.divf %78, %79 : vector<2x32xf32>
    %81 = math.tanh %75 : vector<2x32xf32>
    %82 = arith.select %31, %81, %80 : vector<2x32xi1>, vector<2x32xf32>
    %83 = vector.extract_strided_slice %82 {offsets = [0, 0], sizes = [2, 8], strides = [1, 1]} : vector<2x32xf32> to vector<2x8xf32>
    %84 = vector.extract_strided_slice %82 {offsets = [0, 8], sizes = [2, 8], strides = [1, 1]} : vector<2x32xf32> to vector<2x8xf32>
    %85 = vector.extract_strided_slice %82 {offsets = [0, 16], sizes = [2, 8], strides = [1, 1]} : vector<2x32xf32> to vector<2x8xf32>
    %86 = vector.extract_strided_slice %82 {offsets = [0, 24], sizes = [2, 8], strides = [1, 1]} : vector<2x32xf32> to vector<2x8xf32>
    %87 = arith.mulf %84, %69 : vector<2x8xf32>
    %88 = arith.mulf %83, %85 : vector<2x8xf32>
    %89 = arith.addf %87, %88 : vector<2x8xf32>
    %90 = math.tanh %89 : vector<2x8xf32>
    %91 = arith.mulf %86, %90 : vector<2x8xf32>
    %92 = vector.extract_strided_slice %18 {offsets = [3, 0, 0], sizes = [1, 2, 32], strides = [1, 1, 1]} : vector<8x2x32xf32> to vector<1x2x32xf32>
    %93 = vector.shape_cast %92 : vector<1x2x32xf32> to vector<2x32xf32>
    %cst_19 = arith.constant dense<0.000000e+00> : vector<2x32xf32>
    %94 = tpu.matmul %91, %2, %cst_19 {dimension_numbers = #tpu.dot_dimension_numbers<[1], [0], [0], [1], [0, 0, 1, 1], [], []>} : vector<2x8xf32>, vector<8x32xf32>, vector<2x32xf32> -> vector<2x32xf32>
    %95 = arith.addf %93, %94 : vector<2x32xf32>
    %96 = arith.negf %95 : vector<2x32xf32>
    %97 = math.exp %96 : vector<2x32xf32>
    %cst_20 = arith.constant 1.000000e+00 : f32
    %98 = vector.broadcast %cst_20 : f32 to vector<2x32xf32>
    %99 = arith.addf %98, %97 : vector<2x32xf32>
    %100 = arith.divf %98, %99 : vector<2x32xf32>
    %101 = math.tanh %95 : vector<2x32xf32>
    %102 = arith.select %31, %101, %100 : vector<2x32xi1>, vector<2x32xf32>
    %103 = vector.extract_strided_slice %102 {offsets = [0, 0], sizes = [2, 8], strides = [1, 1]} : vector<2x32xf32> to vector<2x8xf32>
    %104 = vector.extract_strided_slice %102 {offsets = [0, 8], sizes = [2, 8], strides = [1, 1]} : vector<2x32xf32> to vector<2x8xf32>
    %105 = vector.extract_strided_slice %102 {offsets = [0, 16], sizes = [2, 8], strides = [1, 1]} : vector<2x32xf32> to vector<2x8xf32>
    %106 = vector.extract_strided_slice %102 {offsets = [0, 24], sizes = [2, 8], strides = [1, 1]} : vector<2x32xf32> to vector<2x8xf32>
    %107 = arith.mulf %104, %89 : vector<2x8xf32>
    %108 = arith.mulf %103, %105 : vector<2x8xf32>
    %109 = arith.addf %107, %108 : vector<2x8xf32>
    %110 = math.tanh %109 : vector<2x8xf32>
    %111 = arith.mulf %106, %110 : vector<2x8xf32>
    %112 = vector.extract_strided_slice %18 {offsets = [4, 0, 0], sizes = [1, 2, 32], strides = [1, 1, 1]} : vector<8x2x32xf32> to vector<1x2x32xf32>
    %113 = vector.shape_cast %112 : vector<1x2x32xf32> to vector<2x32xf32>
    %cst_21 = arith.constant dense<0.000000e+00> : vector<2x32xf32>
    %114 = tpu.matmul %111, %2, %cst_21 {dimension_numbers = #tpu.dot_dimension_numbers<[1], [0], [0], [1], [0, 0, 1, 1], [], []>} : vector<2x8xf32>, vector<8x32xf32>, vector<2x32xf32> -> vector<2x32xf32>
    %115 = arith.addf %113, %114 : vector<2x32xf32>
    %116 = arith.negf %115 : vector<2x32xf32>
    %117 = math.exp %116 : vector<2x32xf32>
    %cst_22 = arith.constant 1.000000e+00 : f32
    %118 = vector.broadcast %cst_22 : f32 to vector<2x32xf32>
    %119 = arith.addf %118, %117 : vector<2x32xf32>
    %120 = arith.divf %118, %119 : vector<2x32xf32>
    %121 = math.tanh %115 : vector<2x32xf32>
    %122 = arith.select %31, %121, %120 : vector<2x32xi1>, vector<2x32xf32>
    %123 = vector.extract_strided_slice %122 {offsets = [0, 0], sizes = [2, 8], strides = [1, 1]} : vector<2x32xf32> to vector<2x8xf32>
    %124 = vector.extract_strided_slice %122 {offsets = [0, 8], sizes = [2, 8], strides = [1, 1]} : vector<2x32xf32> to vector<2x8xf32>
    %125 = vector.extract_strided_slice %122 {offsets = [0, 16], sizes = [2, 8], strides = [1, 1]} : vector<2x32xf32> to vector<2x8xf32>
    %126 = vector.extract_strided_slice %122 {offsets = [0, 24], sizes = [2, 8], strides = [1, 1]} : vector<2x32xf32> to vector<2x8xf32>
    %127 = arith.mulf %124, %109 : vector<2x8xf32>
    %128 = arith.mulf %123, %125 : vector<2x8xf32>
    %129 = arith.addf %127, %128 : vector<2x8xf32>
    %130 = math.tanh %129 : vector<2x8xf32>
    %131 = arith.mulf %126, %130 : vector<2x8xf32>
    %132 = vector.extract_strided_slice %18 {offsets = [5, 0, 0], sizes = [1, 2, 32], strides = [1, 1, 1]} : vector<8x2x32xf32> to vector<1x2x32xf32>
    %133 = vector.shape_cast %132 : vector<1x2x32xf32> to vector<2x32xf32>
    %cst_23 = arith.constant dense<0.000000e+00> : vector<2x32xf32>
    %134 = tpu.matmul %131, %2, %cst_23 {dimension_numbers = #tpu.dot_dimension_numbers<[1], [0], [0], [1], [0, 0, 1, 1], [], []>} : vector<2x8xf32>, vector<8x32xf32>, vector<2x32xf32> -> vector<2x32xf32>
    %135 = arith.addf %133, %134 : vector<2x32xf32>
    %136 = arith.negf %135 : vector<2x32xf32>
    %137 = math.exp %136 : vector<2x32xf32>
    %cst_24 = arith.constant 1.000000e+00 : f32
    %138 = vector.broadcast %cst_24 : f32 to vector<2x32xf32>
    %139 = arith.addf %138, %137 : vector<2x32xf32>
    %140 = arith.divf %138, %139 : vector<2x32xf32>
    %141 = math.tanh %135 : vector<2x32xf32>
    %142 = arith.select %31, %141, %140 : vector<2x32xi1>, vector<2x32xf32>
    %143 = vector.extract_strided_slice %142 {offsets = [0, 0], sizes = [2, 8], strides = [1, 1]} : vector<2x32xf32> to vector<2x8xf32>
    %144 = vector.extract_strided_slice %142 {offsets = [0, 8], sizes = [2, 8], strides = [1, 1]} : vector<2x32xf32> to vector<2x8xf32>
    %145 = vector.extract_strided_slice %142 {offsets = [0, 16], sizes = [2, 8], strides = [1, 1]} : vector<2x32xf32> to vector<2x8xf32>
    %146 = vector.extract_strided_slice %142 {offsets = [0, 24], sizes = [2, 8], strides = [1, 1]} : vector<2x32xf32> to vector<2x8xf32>
    %147 = arith.mulf %144, %129 : vector<2x8xf32>
    %148 = arith.mulf %143, %145 : vector<2x8xf32>
    %149 = arith.addf %147, %148 : vector<2x8xf32>
    %150 = math.tanh %149 : vector<2x8xf32>
    %151 = arith.mulf %146, %150 : vector<2x8xf32>
    %152 = vector.extract_strided_slice %18 {offsets = [6, 0, 0], sizes = [1, 2, 32], strides = [1, 1, 1]} : vector<8x2x32xf32> to vector<1x2x32xf32>
    %153 = vector.shape_cast %152 : vector<1x2x32xf32> to vector<2x32xf32>
    %cst_25 = arith.constant dense<0.000000e+00> : vector<2x32xf32>
    %154 = tpu.matmul %151, %2, %cst_25 {dimension_numbers = #tpu.dot_dimension_numbers<[1], [0], [0], [1], [0, 0, 1, 1], [], []>} : vector<2x8xf32>, vector<8x32xf32>, vector<2x32xf32> -> vector<2x32xf32>
    %155 = arith.addf %153, %154 : vector<2x32xf32>
    %156 = arith.negf %155 : vector<2x32xf32>
    %157 = math.exp %156 : vector<2x32xf32>
    %cst_26 = arith.constant 1.000000e+00 : f32
    %158 = vector.broadcast %cst_26 : f32 to vector<2x32xf32>
    %159 = arith.addf %158, %157 : vector<2x32xf32>
    %160 = arith.divf %158, %159 : vector<2x32xf32>
    %161 = math.tanh %155 : vector<2x32xf32>
    %162 = arith.select %31, %161, %160 : vector<2x32xi1>, vector<2x32xf32>
    %163 = vector.extract_strided_slice %162 {offsets = [0, 0], sizes = [2, 8], strides = [1, 1]} : vector<2x32xf32> to vector<2x8xf32>
    %164 = vector.extract_strided_slice %162 {offsets = [0, 8], sizes = [2, 8], strides = [1, 1]} : vector<2x32xf32> to vector<2x8xf32>
    %165 = vector.extract_strided_slice %162 {offsets = [0, 16], sizes = [2, 8], strides = [1, 1]} : vector<2x32xf32> to vector<2x8xf32>
    %166 = vector.extract_strided_slice %162 {offsets = [0, 24], sizes = [2, 8], strides = [1, 1]} : vector<2x32xf32> to vector<2x8xf32>
    %167 = arith.mulf %164, %149 : vector<2x8xf32>
    %168 = arith.mulf %163, %165 : vector<2x8xf32>
    %169 = arith.addf %167, %168 : vector<2x8xf32>
    %170 = math.tanh %169 : vector<2x8xf32>
    %171 = arith.mulf %166, %170 : vector<2x8xf32>
    %172 = vector.extract_strided_slice %18 {offsets = [7, 0, 0], sizes = [1, 2, 32], strides = [1, 1, 1]} : vector<8x2x32xf32> to vector<1x2x32xf32>
    %173 = vector.shape_cast %172 : vector<1x2x32xf32> to vector<2x32xf32>
    %cst_27 = arith.constant dense<0.000000e+00> : vector<2x32xf32>
    %174 = tpu.matmul %171, %2, %cst_27 {dimension_numbers = #tpu.dot_dimension_numbers<[1], [0], [0], [1], [0, 0, 1, 1], [], []>} : vector<2x8xf32>, vector<8x32xf32>, vector<2x32xf32> -> vector<2x32xf32>
    %175 = arith.addf %173, %174 : vector<2x32xf32>
    %176 = arith.negf %175 : vector<2x32xf32>
    %177 = math.exp %176 : vector<2x32xf32>
    %cst_28 = arith.constant 1.000000e+00 : f32
    %178 = vector.broadcast %cst_28 : f32 to vector<2x32xf32>
    %179 = arith.addf %178, %177 : vector<2x32xf32>
    %180 = arith.divf %178, %179 : vector<2x32xf32>
    %181 = math.tanh %175 : vector<2x32xf32>
    %182 = arith.select %31, %181, %180 : vector<2x32xi1>, vector<2x32xf32>
    %183 = vector.extract_strided_slice %182 {offsets = [0, 0], sizes = [2, 8], strides = [1, 1]} : vector<2x32xf32> to vector<2x8xf32>
    %184 = vector.extract_strided_slice %182 {offsets = [0, 8], sizes = [2, 8], strides = [1, 1]} : vector<2x32xf32> to vector<2x8xf32>
    %185 = vector.extract_strided_slice %182 {offsets = [0, 16], sizes = [2, 8], strides = [1, 1]} : vector<2x32xf32> to vector<2x8xf32>
    %186 = vector.extract_strided_slice %182 {offsets = [0, 24], sizes = [2, 8], strides = [1, 1]} : vector<2x32xf32> to vector<2x8xf32>
    %187 = arith.mulf %184, %169 : vector<2x8xf32>
    %188 = arith.mulf %183, %185 : vector<2x8xf32>
    %189 = arith.addf %187, %188 : vector<2x8xf32>
    %190 = math.tanh %189 : vector<2x8xf32>
    %191 = arith.mulf %186, %190 : vector<2x8xf32>
    %cst_29 = arith.constant dense<0.000000e+00> : vector<2x32xf32>
    %192 = tpu.matmul %8, %5, %cst_29 {dimension_numbers = #tpu.dot_dimension_numbers<[1], [0], [0], [1], [0, 0, 1, 1], [], []>} : vector<2x8xf32>, vector<8x32xf32>, vector<2x32xf32> -> vector<2x32xf32>
    %193 = arith.addf %25, %192 : vector<2x32xf32>
    %194 = arith.negf %193 : vector<2x32xf32>
    %195 = math.exp %194 : vector<2x32xf32>
    %cst_30 = arith.constant 1.000000e+00 : f32
    %196 = vector.broadcast %cst_30 : f32 to vector<2x32xf32>
    %197 = arith.addf %196, %195 : vector<2x32xf32>
    %198 = arith.divf %196, %197 : vector<2x32xf32>
    %199 = math.tanh %193 : vector<2x32xf32>
    %200 = arith.select %31, %199, %198 : vector<2x32xi1>, vector<2x32xf32>
    %201 = vector.extract_strided_slice %200 {offsets = [0, 0], sizes = [2, 8], strides = [1, 1]} : vector<2x32xf32> to vector<2x8xf32>
    %202 = vector.extract_strided_slice %200 {offsets = [0, 8], sizes = [2, 8], strides = [1, 1]} : vector<2x32xf32> to vector<2x8xf32>
    %203 = vector.extract_strided_slice %200 {offsets = [0, 16], sizes = [2, 8], strides = [1, 1]} : vector<2x32xf32> to vector<2x8xf32>
    %204 = vector.extract_strided_slice %200 {offsets = [0, 24], sizes = [2, 8], strides = [1, 1]} : vector<2x32xf32> to vector<2x8xf32>
    %205 = arith.mulf %202, %9 : vector<2x8xf32>
    %206 = arith.mulf %201, %203 : vector<2x8xf32>
    %207 = arith.addf %205, %206 : vector<2x8xf32>
    %208 = math.tanh %207 : vector<2x8xf32>
    %209 = arith.mulf %204, %208 : vector<2x8xf32>
    %210 = vector.extract_strided_slice %10 {offsets = [0, 0], sizes = [1, 8], strides = [1, 1]} : vector<1x32xf32> to vector<1x8xf32>
    %211 = vector.extract_strided_slice %10 {offsets = [0, 8], sizes = [1, 8], strides = [1, 1]} : vector<1x32xf32> to vector<1x8xf32>
    %212 = vector.extract_strided_slice %10 {offsets = [0, 16], sizes = [1, 1], strides = [1, 1]} : vector<1x32xf32> to vector<1x1xf32>
    %213 = vector.broadcast %210 : vector<1x8xf32> to vector<2x8xf32>
    %214 = arith.mulf %191, %213 : vector<2x8xf32>
    %215 = vector.broadcast %211 : vector<1x8xf32> to vector<2x8xf32>
    %216 = arith.mulf %209, %215 : vector<2x8xf32>
    %217 = arith.addf %214, %216 : vector<2x8xf32>
    %cst_31 = arith.constant dense<0.000000e+00> : vector<2xf32>
    %218 = vector.multi_reduction <add>, %217, %cst_31 [1] : vector<2x8xf32> to vector<2xf32>
    %219 = vector.shape_cast %218 : vector<2xf32> to vector<2x1xf32>
    %220 = vector.broadcast %212 : vector<1x1xf32> to vector<2x1xf32>
    %221 = arith.addf %219, %220 : vector<2x1xf32>
    %c0_32 = arith.constant 0 : index
    %c0_33 = arith.constant 0 : index
    %222 = vector.load %arg2[%c0_32, %c0_33] : memref<2x1xf32, #tpu.memory_space<vmem>>, vector<2x1xf32>
    tpu.vector_store %arg2[%c0_32, %c0_33], %221 {strides = array<i32>} : memref<2x1xf32, #tpu.memory_space<vmem>>, vector<2x1xf32>,
    return
  }
}

</mosaic_0001>

<bundles_post_ra>
// kernel: tpu_custom_call.1
= control target key start
LH: loop header
LB: loop body
LE: loop exit
PB: predicated region body
PF: predicated region fallthrough
CT: control target
= control target key end

     0   :  { %7 = vsyncpa [#allocation3], 0  ;;  %s1263_s9 = smov [#allocation2]   ;;  %s1446_s0 = inlined_call_operand.vmem [shape: f32[8,2,1], index: 0, kind: input, shape index: {}]   ;;  %s1447_s1 = inlined_call_operand.hbm [shape: f32[29,32], index: 1, kind: input, shape index: {}]   ;;  %s1448_s2 = inlined_call_operand.vmem [shape: f32[2,1], index: 2, kind: output, shape index: {}]  }
   0x1   :  { %s15_s10 = sshll.u32 %s1263_s9, 4  ;;  %s16_s10 = int_to_ptr.vmem [resolvable:$true] %s15_s10 }
   0x2   :  { %s1249_s11 = scalar_lea.vmem %s16_s10, 512  ;;  %p1254_p1 = scmp.lt.s32.totalorder %s16_s10, %s16_s10 }
   0x3   :  { %p1250_p0 = scmp.ne.s32.totalorder %s16_s10, %s1249_s11  ;;  %p1255_p2 = scmp.lt.s32.totalorder %s1249_s11, %s1249_s11 }
   0x5   :  { %p1256_p3 = por %p1255_p2, %p1254_p1 }
   0x7   :  { %p1257_p4 = pnand %p1256_p3, %p1250_p0 }
   0x9   :  { %1260 = shalt.err (!%p1257_p4)
}
   0xa   :  { %s1264_s12 = smov 128   ;;  %s1265_s13 = smov 8  }
   0xb   :  { %21 = dma.hbm_to_vmem [thread:$0]  %s1447_s1, 512, %s16_s10, [#allocation3], %s1264_s12, %s1264_s12, %s1265_s13  }
   0xc   :  { %1261 = dma.done.wait [#allocation3], 512  }
   0xd   :  { %1262 = vsyncadd [#allocation3], 4294966784  ;;  %v1266_v0 = vmov 0.0   ;;  %vm1267_vm0 = vmmov 0   ;;  %v1268_v1 = vmov 0   ;;  %vm123_vm1 = vcmask 64512  }
   0xe   :  { %1112 = vmatprep.subr.mxu0 %v1266_v0  ;;  %1114 = vmatprep.mubr.msk.f32.mxu0 %vm1267_vm0, %v1266_v0  ;;  %v1298_v2 = vld [vmem:[#allocation2 + $0x2] sm:$0xff]  ;;  %v31_v3 = vld [vmem:[#allocation2 + $0x14] sm:$0x3]  ;;  %v36_v4 = vld [vmem:[%s1446_s0] sm:$0x3]  ;;  %v118_v17 = vlaneseq  ;;  %s1269_s17 = smov 112  }
   0xf   :  { %1167 = vset.pattern.permute.xlu0 %v1268_v1  ;;  %1117 = vmatprep.subr.mxu1 %v1266_v0  ;;  %v32_v5 = vld [vmem:[#allocation2 + $0x16] sm:$0x3]  ;;  %v1313_v7 = vld [vmem:[#allocation2] ss:$0 sm:$0xff]  ;;  %v1316_v9 = vld [vmem:[#allocation2 + $0x1] ss:$0 sm:$0xff] }
  0x10   :  { %1119 = vmatprep.mubr.msk.f32.mxu1 %vm1267_vm0, %v1266_v0  ;;  %1168 = vset.pattern.permute.xlu1 %v1268_v1  ;;  %v119_v18 = vand.u32 127, %v118_v17  ;;  %s1270_s18 = smov 16   ;;  %v37_v30 = vld [vmem:[%s1446_s0 + $0x2] sm:$0x3]  ;;  %s1271_s21 = smov 104   ;;  %vm1055_vm5 = vcmask 58368  }
  0x11   :  { %1113 = vmatpush3.msra.mxu0 %v1298_v2  ;;  %46 = vperm.xlu0 %1167, %v36_v4   ;;  %v38_v52 = vld [vmem:[%s1446_s0 + $0x4] sm:$0x3]  ;;  %vm1064_vm6 = vcmask 1024  }
  0x12   :  { %1115 = vmatmul.mubr.msk.f32.vlgmr.msra.gmra.mxu0 %vm123_vm1, %v31_v3  ;;  %207 = vrot.lane.b32.xlu1 %v32_v5, %s1265_s13  ;;  %vm120_vm2 = vcmp.ge.s32.totalorder %v119_v18, 16  ;;  %vm121_vm3 = vcmp.lt.s32.totalorder %v119_v18, 24 }
  0x13   :  { %1118 = vmatpush3.msra.mxu1 %v1298_v2  ;;  %1122 = vmatprep.subr.mxu0 %v1266_v0  ;;  %vm1319_vm4 = vmand %vm120_vm2, %vm121_vm3 }
  0x14   :  { %1123 = vmatpush3.msra.mxu0 %v1298_v2  ;;  %1124 = vmatprep.mubr.msk.f32.mxu0 %vm1267_vm0, %v1266_v0 }
  0x15   :  { %1127 = vmatprep.subr.mxu1 %v1266_v0  ;;  %1132 = vmatprep.subr.mxu0 %v1266_v0 }
  0x84   :  { %v208_v25 = vpop.permute.xlu1 %207 }
  0x8c   :  { %v47_v6 = vpop.permute.xlu0 %46 }
  0x8d   :  { %v88_v8 = vmul.f32 %v1313_v7, %v47_v6 }
  0x8f   :  { %v100_v10 = vadd.f32 %v1316_v9, %v88_v8 }
  0xd2   :  { %v193_v11 = vpop.f32.mrf.mxu0 }
  0xd3   :  { %v197_v12 = vadd.f32 %v193_v11, %v100_v10 }
  0xd4   :  { %v1116_v13 = vpop.f32.mrf.mxu0 }
  0xd5   :  { %v1076_v14 = vmul.f32 -1.442695, %v197_v12 }
  0xd7   :  { %1169 = vpow2.f32 %v1076_v14  ;;  %v39_v14 = vld [vmem:[%s1446_s0 + $0x6] sm:$0x3] }
  0xd8   :  { %1171 = vtanh.f32 %v197_v12 }
  0xe4   :  { %v1170_v15 = vpop.eup %1169 }
  0xe5   :  { %v201_v16 = vadd.f32 1.0, %v1170_v15  ;;  %v1172_v20 = vpop.eup %1171 }
  0xe7   :  { %1173 = vrcp.f32 %v201_v16 }
  0xf4   :  { %v1174_v21 = vpop.eup %1173 }
  0xf5   :  { %v205_v22 = vsel %vm1319_vm4, %v1172_v20, %v1174_v21 }
  0xf6   :  { %212 = vrot.lane.b32.xlu0 %v205_v22, %s1269_s17  ;;  %v210_v26 = vmul.f32 %v208_v25, %v205_v22 }
 0x168   :  { %v213_v23 = vpop.permute.xlu0 %212 }
 0x169   :  { %v215_v24 = vmul.f32 %v213_v23, %v205_v22 }
 0x16b   :  { %217 = vrot.lane.b32.xlu1 %v215_v24, %s1265_s13 }
 0x1dd   :  { %v218_v27 = vpop.permute.xlu1 %217 }
 0x1de   :  { %v220_v28 = vadd.f32 %v218_v27, %v210_v26 }
 0x1e0   :  { %1175 = vtanh.f32 %v220_v28 }
 0x1ed   :  { %v1176_v29 = vpop.eup %1175 }
 0x1ee   :  { %223 = vrot.lane.b32.xlu0 %v1176_v29, %s1270_s18 }
 0x1f2   :  { %51 = vperm.xlu0 %1167, %v37_v30  }
 0x260   :  { %v224_v31 = vpop.permute.xlu0 %223 }
 0x261   :  { %v226_v32 = vmul.f32 %v224_v31, %v205_v22 }
 0x263   :  { %228 = vrot.lane.b32.xlu1 %v226_v32, %s1271_s21 }
 0x26d   :  { %v52_v34 = vpop.permute.xlu0 %51 }
 0x26e   :  { %v89_v35 = vmul.f32 %v1313_v7, %v52_v34 }
 0x270   :  { %v101_v36 = vadd.f32 %v1316_v9, %v89_v35 }
 0x2d5   :  { %v229_v33 = vpop.permute.xlu1 %228 }
 0x2d6   :  { %1120 = vmatmul.mubr.msk.f32.vlgmr.msra.gmra.mxu1 %vm123_vm1, %v229_v33 }
 0x2d7   :  { %1128 = vmatpush3.msra.mxu1 %v1298_v2  ;;  %1129 = vmatprep.mubr.msk.f32.mxu1 %vm1267_vm0, %v1266_v0 }
 0x2d8   :  { %1137 = vmatprep.subr.mxu1 %v1266_v0 }
 0x396   :  { %v298_v37 = vpop.f32.mrf.mxu1 }
 0x397   :  { %v302_v38 = vadd.f32 %v298_v37, %v101_v36  ;;  %v40_v37 = vld [vmem:[%s1446_s0 + $0x8] sm:$0x3] }
 0x398   :  { %v1121_v39 = vpop.f32.mrf.mxu1 }
 0x399   :  { %v1078_v40 = vmul.f32 -1.442695, %v302_v38 }
 0x39b   :  { %1177 = vpow2.f32 %v1078_v40 }
 0x39c   :  { %1179 = vtanh.f32 %v302_v38 }
 0x3a8   :  { %v1178_v41 = vpop.eup %1177 }
 0x3a9   :  { %v306_v42 = vadd.f32 1.0, %v1178_v41  ;;  %v1180_v43 = vpop.eup %1179 }
 0x3ab   :  { %1181 = vrcp.f32 %v306_v42 }
 0x3b8   :  { %v1182_v44 = vpop.eup %1181 }
 0x3b9   :  { %v310_v45 = vsel %vm1319_vm4, %v1180_v43, %v1182_v44 }
 0x3ba   :  { %313 = vrot.lane.b32.xlu1 %v310_v45, %s1269_s17  ;;  %v311_v48 = vmul.f32 %v310_v45, %v220_v28 }
 0x42c   :  { %v314_v46 = vpop.permute.xlu1 %313 }
 0x42d   :  { %v316_v47 = vmul.f32 %v314_v46, %v310_v45 }
 0x42f   :  { %318 = vrot.lane.b32.xlu0 %v316_v47, %s1265_s13 }
 0x4a1   :  { %v319_v49 = vpop.permute.xlu0 %318 }
 0x4a2   :  { %v321_v50 = vadd.f32 %v319_v49, %v311_v48 }
 0x4a4   :  { %1183 = vtanh.f32 %v321_v50 }
 0x4b1   :  { %v1184_v51 = vpop.eup %1183 }
 0x4b2   :  { %324 = vrot.lane.b32.xlu1 %v1184_v51, %s1270_s18 }
 0x4b6   :  { %56 = vperm.xlu1 %1168, %v38_v52  }
 0x524   :  { %v325_v53 = vpop.permute.xlu1 %324 }
 0x525   :  { %v327_v54 = vmul.f32 %v325_v53, %v310_v45 }
 0x527   :  { %329 = vrot.lane.b32.xlu0 %v327_v54, %s1271_s21 }
 0x531   :  { %v57_v56 = vpop.permute.xlu1 %56 }
 0x532   :  { %v90_v57 = vmul.f32 %v1313_v7, %v57_v56 }
 0x534   :  { %v102_v58 = vadd.f32 %v1316_v9, %v90_v57 }
 0x599   :  { %v330_v55 = vpop.permute.xlu0 %329 }
 0x59a   :  { %1125 = vmatmul.mubr.msk.f32.vlgmr.msra.gmra.mxu0 %vm123_vm1, %v330_v55 }
 0x59b   :  { %1133 = vmatpush3.msra.mxu0 %v1298_v2  ;;  %1134 = vmatprep.mubr.msk.f32.mxu0 %vm1267_vm0, %v1266_v0 }
 0x59c   :  { %1142 = vmatprep.subr.mxu0 %v1266_v0 }
 0x65a   :  { %v399_v59 = vpop.f32.mrf.mxu0 }
 0x65b   :  { %v403_v60 = vadd.f32 %v399_v59, %v102_v58  ;;  %v41_v59 = vld [vmem:[%s1446_s0 + $0xa] sm:$0x3] }
 0x65c   :  { %v1126_v61 = vpop.f32.mrf.mxu0 }
 0x65d   :  { %v1080_v62 = vmul.f32 -1.442695, %v403_v60 }
 0x65f   :  { %1185 = vpow2.f32 %v1080_v62 }
 0x660   :  { %1187 = vtanh.f32 %v403_v60 }
 0x66c   :  { %v1186_v63 = vpop.eup %1185 }
 0x66d   :  { %v407_v1 = vadd.f32 1.0, %v1186_v63  ;;  %v1188_v3 = vpop.eup %1187 }
 0x66f   :  { %1189 = vrcp.f32 %v407_v1 }
 0x67c   :  { %v1190_v4 = vpop.eup %1189 }
 0x67d   :  { %v411_v5 = vsel %vm1319_vm4, %v1188_v3, %v1190_v4 }
 0x67e   :  { %414 = vrot.lane.b32.xlu0 %v411_v5, %s1269_s17  ;;  %v412_v10 = vmul.f32 %v411_v5, %v321_v50 }
 0x6f0   :  { %v415_v6 = vpop.permute.xlu0 %414 }
 0x6f1   :  { %v417_v8 = vmul.f32 %v415_v6, %v411_v5 }
 0x6f3   :  { %419 = vrot.lane.b32.xlu1 %v417_v8, %s1265_s13 }
 0x765   :  { %v420_v11 = vpop.permute.xlu1 %419 }
 0x766   :  { %v422_v12 = vadd.f32 %v420_v11, %v412_v10 }
 0x768   :  { %1191 = vtanh.f32 %v422_v12 }
 0x775   :  { %v1192_v13 = vpop.eup %1191 }
 0x776   :  { %425 = vrot.lane.b32.xlu0 %v1192_v13, %s1270_s18 }
 0x77a   :  { %61 = vperm.xlu0 %1167, %v39_v14  }
 0x7e8   :  { %v426_v15 = vpop.permute.xlu0 %425 }
 0x7e9   :  { %v428_v16 = vmul.f32 %v426_v15, %v411_v5 }
 0x7eb   :  { %430 = vrot.lane.b32.xlu1 %v428_v16, %s1271_s21 }
 0x7f5   :  { %v62_v18 = vpop.permute.xlu0 %61 }
 0x7f6   :  { %v91_v20 = vmul.f32 %v1313_v7, %v62_v18 }
 0x7f8   :  { %v103_v21 = vadd.f32 %v1316_v9, %v91_v20 }
 0x85d   :  { %v431_v17 = vpop.permute.xlu1 %430 }
 0x85e   :  { %1130 = vmatmul.mubr.msk.f32.vlgmr.msra.gmra.mxu1 %vm123_vm1, %v431_v17 }
 0x85f   :  { %1138 = vmatpush3.msra.mxu1 %v1298_v2  ;;  %1139 = vmatprep.mubr.msk.f32.mxu1 %vm1267_vm0, %v1266_v0 }
 0x860   :  { %1147 = vmatprep.subr.mxu1 %v1266_v0 }
 0x91e   :  { %v500_v22 = vpop.f32.mrf.mxu1 }
 0x91f   :  { %v504_v23 = vadd.f32 %v500_v22, %v103_v21  ;;  %v42_v21 = vld [vmem:[%s1446_s0 + $0xc] sm:$0x3] }
 0x920   :  { %v1131_v24 = vpop.f32.mrf.mxu1 }
 0x921   :  { %v1082_v25 = vmul.f32 -1.442695, %v504_v23 }
 0x923   :  { %1193 = vpow2.f32 %v1082_v25 }
 0x924   :  { %1195 = vtanh.f32 %v504_v23 }
 0x930   :  { %v1194_v26 = vpop.eup %1193 }
 0x931   :  { %v508_v27 = vadd.f32 1.0, %v1194_v26  ;;  %v1196_v28 = vpop.eup %1195 }
 0x933   :  { %1197 = vrcp.f32 %v508_v27 }
 0x940   :  { %v1198_v29 = vpop.eup %1197 }
 0x941   :  { %v512_v30 = vsel %vm1319_vm4, %v1196_v28, %v1198_v29 }
 0x942   :  { %515 = vrot.lane.b32.xlu1 %v512_v30, %s1269_s17  ;;  %v513_v33 = vmul.f32 %v512_v30, %v422_v12 }
 0x9b4   :  { %v516_v31 = vpop.permute.xlu1 %515 }
 0x9b5   :  { %v518_v32 = vmul.f32 %v516_v31, %v512_v30 }
 0x9b7   :  { %520 = vrot.lane.b32.xlu0 %v518_v32, %s1265_s13 }
 0xa29   :  { %v521_v34 = vpop.permute.xlu0 %520 }
 0xa2a   :  { %v523_v35 = vadd.f32 %v521_v34, %v513_v33  ;;  %v30_v34 = vld [vmem:[#allocation2 + $0xc] sm:$0xff] }
 0xa2c   :  { %1199 = vtanh.f32 %v523_v35 }
 0xa39   :  { %v1200_v36 = vpop.eup %1199 }
 0xa3a   :  { %526 = vrot.lane.b32.xlu1 %v1200_v36, %s1270_s18 }
 0xa3e   :  { %66 = vperm.xlu1 %1168, %v40_v37  }
 0xaac   :  { %v527_v38 = vpop.permute.xlu1 %526 }
 0xaad   :  { %v529_v39 = vmul.f32 %v527_v38, %v512_v30 }
 0xaaf   :  { %531 = vrot.lane.b32.xlu0 %v529_v39, %s1271_s21 }
 0xab9   :  { %v67_v41 = vpop.permute.xlu1 %66 }
 0xaba   :  { %v92_v42 = vmul.f32 %v1313_v7, %v67_v41 }
 0xabc   :  { %v104_v43 = vadd.f32 %v1316_v9, %v92_v42 }
 0xb21   :  { %v532_v40 = vpop.permute.xlu0 %531 }
 0xb22   :  { %1135 = vmatmul.mubr.msk.f32.vlgmr.msra.gmra.mxu0 %vm123_vm1, %v532_v40 }
 0xb23   :  { %1143 = vmatpush3.msra.mxu0 %v1298_v2  ;;  %1144 = vmatprep.mubr.msk.f32.mxu0 %vm1267_vm0, %v1266_v0 }
 0xb24   :  { %1152 = vmatprep.subr.mxu0 %v1266_v0 }
 0xbe2   :  { %v601_v44 = vpop.f32.mrf.mxu0 }
 0xbe3   :  { %v605_v45 = vadd.f32 %v601_v44, %v104_v43  ;;  %v43_v44 = vld [vmem:[%s1446_s0 + $0xe] sm:$0x3]  ;;  %s1272_s0 = smov 24  }
 0xbe4   :  { %v1136_v46 = vpop.f32.mrf.mxu0 }
 0xbe5   :  { %v1084_v47 = vmul.f32 -1.442695, %v605_v45 }
 0xbe7   :  { %1201 = vpow2.f32 %v1084_v47 }
 0xbe8   :  { %1203 = vtanh.f32 %v605_v45 }
 0xbf4   :  { %v1202_v48 = vpop.eup %1201 }
 0xbf5   :  { %v609_v49 = vadd.f32 1.0, %v1202_v48  ;;  %v1204_v50 = vpop.eup %1203 }
 0xbf7   :  { %1205 = vrcp.f32 %v609_v49  ;;  %v1073_v49 = vld [vmem:[#allocation2 + $0xa] ss:$0 sm:$0xff] }
 0xc04   :  { %v1206_v51 = vpop.eup %1205 }
 0xc05   :  { %v613_v52 = vsel %vm1319_vm4, %v1204_v50, %v1206_v51  ;;  %v1074_v51 = vld [vmem:[#allocation2 + $0xb] ss:$0 sm:$0xff] }
 0xc06   :  { %616 = vrot.lane.b32.xlu0 %v613_v52, %s1269_s17  ;;  %v614_v55 = vmul.f32 %v613_v52, %v523_v35  ;;  %v33_v35 = vld [vmem:[#allocation2 + $0x18] sm:$0x3] }
 0xc78   :  { %v617_v53 = vpop.permute.xlu0 %616 }
 0xc79   :  { %v619_v54 = vmul.f32 %v617_v53, %v613_v52 }
 0xc7b   :  { %621 = vrot.lane.b32.xlu1 %v619_v54, %s1265_s13 }
 0xced   :  { %v622_v56 = vpop.permute.xlu1 %621 }
 0xcee   :  { %v624_v57 = vadd.f32 %v622_v56, %v614_v55 }
 0xcf0   :  { %1207 = vtanh.f32 %v624_v57 }
 0xcfd   :  { %v1208_v58 = vpop.eup %1207 }
 0xcfe   :  { %627 = vrot.lane.b32.xlu0 %v1208_v58, %s1270_s18 }
 0xd02   :  { %71 = vperm.xlu0 %1167, %v41_v59  }
 0xd70   :  { %v628_v60 = vpop.permute.xlu0 %627 }
 0xd71   :  { %v630_v61 = vmul.f32 %v628_v60, %v613_v52 }
 0xd73   :  { %632 = vrot.lane.b32.xlu1 %v630_v61, %s1271_s21 }
 0xd7d   :  { %v72_v63 = vpop.permute.xlu0 %71 }
 0xd7e   :  { %v93_v1 = vmul.f32 %v1313_v7, %v72_v63 }
 0xd80   :  { %v105_v3 = vadd.f32 %v1316_v9, %v93_v1 }
 0xde5   :  { %v633_v62 = vpop.permute.xlu1 %632 }
 0xde6   :  { %1140 = vmatmul.mubr.msk.f32.vlgmr.msra.gmra.mxu1 %vm123_vm1, %v633_v62 }
 0xde7   :  { %1148 = vmatpush3.msra.mxu1 %v1298_v2  ;;  %1149 = vmatprep.mubr.msk.f32.mxu1 %vm1267_vm0, %v1266_v0 }
 0xea6   :  { %v702_v4 = vpop.f32.mrf.mxu1 }
 0xea7   :  { %v706_v5 = vadd.f32 %v702_v4, %v105_v3 }
 0xea8   :  { %v1141_v6 = vpop.f32.mrf.mxu1 }
 0xea9   :  { %v1086_v8 = vmul.f32 -1.442695, %v706_v5 }
 0xeab   :  { %1209 = vpow2.f32 %v1086_v8 }
 0xeac   :  { %1211 = vtanh.f32 %v706_v5 }
 0xeb8   :  { %v1210_v10 = vpop.eup %1209 }
 0xeb9   :  { %v710_v11 = vadd.f32 1.0, %v1210_v10  ;;  %v1212_v12 = vpop.eup %1211 }
 0xebb   :  { %1213 = vrcp.f32 %v710_v11 }
 0xec8   :  { %v1214_v13 = vpop.eup %1213 }
 0xec9   :  { %v714_v2 = vsel %vm1319_vm4, %v1212_v12, %v1214_v13  ;;  %v34_v13 = vld [vmem:[#allocation2 + $0x1a] sm:$0x3] }
 0xeca   :  { %717 = vrot.lane.b32.xlu1 %v714_v2, %s1269_s17  ;;  %v715_v16 = vmul.f32 %v714_v2, %v624_v57 }
 0xf3c   :  { %v718_v14 = vpop.permute.xlu1 %717 }
 0xf3d   :  { %v720_v15 = vmul.f32 %v718_v14, %v714_v2 }
 0xf3f   :  { %722 = vrot.lane.b32.xlu0 %v720_v15, %s1265_s13 }
 0xfb1   :  { %v723_v17 = vpop.permute.xlu0 %722 }
 0xfb2   :  { %v725_v18 = vadd.f32 %v723_v17, %v715_v16 }
 0xfb4   :  { %1215 = vtanh.f32 %v725_v18 }
 0xfc1   :  { %v1216_v20 = vpop.eup %1215 }
 0xfc2   :  { %728 = vrot.lane.b32.xlu1 %v1216_v20, %s1270_s18  ;;  %v1093_v20 = vld [vmem:[#allocation2 + $0x1c] ss:$0 sm:$0xff] }
 0xfc6   :  { %76 = vperm.xlu1 %1168, %v42_v21  }
0x1034   :  { %v729_v22 = vpop.permute.xlu1 %728 }
0x1035   :  { %v731_v23 = vmul.f32 %v729_v22, %v714_v2 }
0x1037   :  { %733 = vrot.lane.b32.xlu0 %v731_v23, %s1271_s21 }
0x1041   :  { %v77_v25 = vpop.permute.xlu1 %76 }
0x1042   :  { %v94_v26 = vmul.f32 %v1313_v7, %v77_v25 }
0x1044   :  { %v106_v27 = vadd.f32 %v1316_v9, %v94_v26 }
0x10a9   :  { %v734_v24 = vpop.permute.xlu0 %733 }
0x10aa   :  { %1145 = vmatmul.mubr.msk.f32.vlgmr.msra.gmra.mxu0 %vm123_vm1, %v734_v24 }
0x10ab   :  { %1154 = vmatprep.mubr.msk.f32.mxu0 %vm1267_vm0, %v1266_v0  ;;  %1153 = vmatpush3.msra.mxu0 %v30_v34 }
0x10ae   :  { %1155 = vmatmul.mubr.msk.f32.vlgmr.msra.gmra.mxu0 %vm123_vm1, %v33_v35 }
0x116a   :  { %v803_v28 = vpop.f32.mrf.mxu0 }
0x116b   :  { %v807_v29 = vadd.f32 %v803_v28, %v106_v27 }
0x116c   :  { %v1146_v30 = vpop.f32.mrf.mxu0 }
0x116d   :  { %v1088_v31 = vmul.f32 -1.442695, %v807_v29 }
0x116e   :  { %v1003_v45 = vpop.f32.mrf.mxu0 }
0x116f   :  { %1217 = vpow2.f32 %v1088_v31 }
0x1170   :  { %1219 = vtanh.f32 %v807_v29  ;;  %v1156_v46 = vpop.f32.mrf.mxu0 }
0x117c   :  { %v1218_v32 = vpop.eup %1217 }
0x117d   :  { %v811_v33 = vadd.f32 1.0, %v1218_v32  ;;  %v1220_v0 = vpop.eup %1219 }
0x117f   :  { %1221 = vrcp.f32 %v811_v33 }
0x118c   :  { %v1222_v36 = vpop.eup %1221 }
0x118d   :  { %v815_v37 = vsel %vm1319_vm4, %v1220_v0, %v1222_v36 }
0x118e   :  { %818 = vrot.lane.b32.xlu0 %v815_v37, %s1269_s17  ;;  %v816_v40 = vmul.f32 %v815_v37, %v725_v18 }
0x1200   :  { %v819_v38 = vpop.permute.xlu0 %818 }
0x1201   :  { %v821_v39 = vmul.f32 %v819_v38, %v815_v37 }
0x1203   :  { %823 = vrot.lane.b32.xlu1 %v821_v39, %s1265_s13 }
0x1275   :  { %v824_v41 = vpop.permute.xlu1 %823 }
0x1276   :  { %v826_v42 = vadd.f32 %v824_v41, %v816_v40 }
0x1278   :  { %1223 = vtanh.f32 %v826_v42 }
0x1285   :  { %v1224_v43 = vpop.eup %1223 }
0x1286   :  { %829 = vrot.lane.b32.xlu0 %v1224_v43, %s1270_s18 }
0x128a   :  { %81 = vperm.xlu0 %1167, %v43_v44  }
0x12f8   :  { %v830_v47 = vpop.permute.xlu0 %829 }
0x12f9   :  { %v832_v48 = vmul.f32 %v830_v47, %v815_v37 }
0x12fb   :  { %834 = vrot.lane.b32.xlu1 %v832_v48, %s1271_s21 }
0x1305   :  { %v82_v50 = vpop.permute.xlu0 %81 }
0x1306   :  { %v112_v52 = vmul.f32 %v1073_v49, %v82_v50  ;;  %v95_v62 = vmul.f32 %v1313_v7, %v82_v50 }
0x1308   :  { %v117_v53 = vadd.f32 %v1074_v51, %v112_v52  ;;  %v107_v63 = vadd.f32 %v1316_v9, %v95_v62 }
0x130a   :  { %v1007_v54 = vadd.f32 %v1003_v45, %v117_v53 }
0x130c   :  { %v1092_v55 = vmul.f32 -1.442695, %v1007_v54 }
0x130e   :  { %1225 = vpow2.f32 %v1092_v55 }
0x130f   :  { %1227 = vtanh.f32 %v1007_v54 }
0x131b   :  { %v1226_v56 = vpop.eup %1225 }
0x131c   :  { %v1011_v57 = vadd.f32 1.0, %v1226_v56  ;;  %v1228_v58 = vpop.eup %1227 }
0x131e   :  { %1229 = vrcp.f32 %v1011_v57 }
0x132b   :  { %v1230_v59 = vpop.eup %1229 }
0x132c   :  { %v1015_v60 = vsel %vm1319_vm4, %v1228_v58, %v1230_v59 }
0x132d   :  { %1022 = vrot.lane.b32.xlu0 %v1015_v60, %s1269_s17 }
0x136d   :  { %v835_v61 = vpop.permute.xlu1 %834 }
0x136e   :  { %1150 = vmatmul.mubr.msk.f32.vlgmr.msra.gmra.mxu1 %vm123_vm1, %v835_v61 }
0x139f   :  { %v1023_v7 = vpop.permute.xlu0 %1022 }
0x13a0   :  { %v1025_v9 = vmul.f32 %v1023_v7, %v1015_v60 }
0x142e   :  { %v904_v1 = vpop.f32.mrf.mxu1 }
0x142f   :  { %v908_v3 = vadd.f32 %v904_v1, %v107_v63 }
0x1430   :  { %v1151_v4 = vpop.f32.mrf.mxu1 }
0x1431   :  { %v1090_v5 = vmul.f32 -1.442695, %v908_v3 }
0x1433   :  { %1231 = vpow2.f32 %v1090_v5 }
0x1434   :  { %1233 = vtanh.f32 %v908_v3 }
0x1440   :  { %v1232_v6 = vpop.eup %1231 }
0x1441   :  { %v912_v8 = vadd.f32 1.0, %v1232_v6  ;;  %v1234_v10 = vpop.eup %1233 }
0x1443   :  { %1235 = vrcp.f32 %v912_v8 }
0x1450   :  { %v1236_v11 = vpop.eup %1235 }
0x1451   :  { %v916_v12 = vsel %vm1319_vm4, %v1234_v10, %v1236_v11 }
0x1452   :  { %919 = vrot.lane.b32.xlu1 %v916_v12, %s1269_s17  ;;  %v917_v21 = vmul.f32 %v916_v12, %v826_v42 }
0x1456   :  { %1017 = vrot.lane.b32.xlu1 %v34_v13, %s1265_s13 }
0x145a   :  { %1027 = vrot.lane.b32.xlu1 %v1025_v9, %s1265_s13 }
0x14c4   :  { %v920_v2 = vpop.permute.xlu1 %919 }
0x14c5   :  { %v922_v14 = vmul.f32 %v920_v2, %v916_v12 }
0x14c7   :  { %924 = vrot.lane.b32.xlu0 %v922_v14, %s1265_s13 }
0x14c8   :  { %v1018_v15 = vpop.permute.xlu1 %1017 }
0x14c9   :  { %v1020_v16 = vmul.f32 %v1018_v15, %v1015_v60 }
0x14cc   :  { %v1028_v17 = vpop.permute.xlu1 %1027 }
0x14cd   :  { %v1030_v18 = vadd.f32 %v1028_v17, %v1020_v16 }
0x14cf   :  { %1237 = vtanh.f32 %v1030_v18 }
0x14dc   :  { %v1238_v19 = vpop.eup %1237 }
0x14dd   :  { %1033 = vrot.lane.b32.xlu1 %v1238_v19, %s1270_s18 }
0x14e1   :  { %1046 = vrot.lane.b32.xlu1 %v1093_v20, %s1270_s18 }
0x1539   :  { %v925_v22 = vpop.permute.xlu0 %924 }
0x153a   :  { %v927_v23 = vadd.f32 %v925_v22, %v917_v21 }
0x153c   :  { %1239 = vtanh.f32 %v927_v23 }
0x1549   :  { %v1240_v24 = vpop.eup %1239 }
0x154a   :  { %930 = vrot.lane.b32.xlu0 %v1240_v24, %s1270_s18 }
0x154e   :  { %1042 = vrot.lane.b32.xlu0 %v1093_v20, %s1272_s0 }
0x154f   :  { %v1034_v25 = vpop.permute.xlu1 %1033 }
0x1550   :  { %v1036_v28 = vmul.f32 %v1034_v25, %v1015_v60 }
0x1553   :  { %v1047_v27 = vpop.permute.xlu1 %1046 }
0x1554   :  { %v1049_v31 = vmul.f32 %v1047_v27, %v1036_v28 }
0x15bc   :  { %v931_v26 = vpop.permute.xlu0 %930 }
0x15bd   :  { %v933_v29 = vmul.f32 %v931_v26, %v916_v12 }
0x15c0   :  { %v1043_v30 = vpop.permute.xlu0 %1042 }
0x15c1   :  { %v1045_v32 = vmul.f32 %v1043_v30, %v933_v29 }
0x15c3   :  { %v1050_v33 = vadd.f32 %v1049_v31, %v1045_v32 }
0x15c5   :  { %1052 = vrot.lane.b32.xlu0 %v1050_v33, %s1271_s21 }
0x1637   :  { %v1053_v34 = vpop.permute.xlu0 %1052 }
0x1638   :  { %v1056_v35 = vsel %vm1055_vm5, %v1053_v34, 0.0 }
0x1639   :  { %1057 = vadd.xlane.f32.xlu1 %v1056_v35 }
0x16c2   :  { %v1058_v0 = vpop.xlane.xlu1 %1057 }
0x16c3   :  { %v1059_v36 = vadd.f32 %v1093_v20, %v1058_v0 }
0x16c5   :  { %1061 = vrot.lane.b32.xlu0 %v1059_v36, %s1269_s17 }
0x1737   :  { %v1062_v37 = vpop.permute.xlu0 %1061 }
0x1738   :  { %1065 = vst.msk [vmem:[%s1448_s2] sm:$0x3] %vm1064_vm6, %v1062_v37 }
0x1739   :  { %1070 = vsyncpa [#allocation3], 1 }

</bundles_post_ra>
